<compile_context>
chip_gen: v5e
topology: v5e:2x2
jax: 0.10.0
libtpu: 0.0.40
codegen_flags: <defaults>
</compile_context>

<pallas_src>
import jax
import jax.numpy as jnp
from jax.experimental import pallas as pl
from jax.experimental.pallas import tpu as pltpu


# ----------------------------- Pallas kernels -------------------------------

def _shifted_rows(x, H):
    """Build the [row h-1 | row h | row h+1] fat operand for the 3 kh taps.

    x: (NB*H, L) f32.  Rows h-1 / h+1 are zeroed at per-image boundaries
    (that is the conv's vertical zero padding), and the whole shifted operand
    is built exactly once so the 3x3 conv becomes a single fat matmul.
    """
    rows, L = x.shape
    z = jnp.zeros((1, L), x.dtype)
    up = jnp.concatenate([z, x[:-1]], axis=0)        # row h-1
    dn = jnp.concatenate([x[1:], z], axis=0)         # row h+1
    r = jax.lax.broadcasted_iota(jnp.int32, (rows, L), 0) % H
    up = jnp.where(r == 0, 0.0, up)                  # top pad (per image)
    dn = jnp.where(r == H - 1, 0.0, dn)              # bottom pad (per image)
    return jnp.concatenate([up, x, dn], axis=1)      # (rows, 3*L)


def _up_conv1_kernel(x1_ref, x2_ref, a_ref, bc_ref, w_ref, b_ref,
                     y_ref, st_ref):
    """Fused bilinear-upsample(x1) + pad + concat([x2, x1_up]) + 3x3 conv1.

    x1_ref: (NB, H1, W1*C1) f32   low-res input, row-flattened NHWC
    x2_ref: (NB, H,  W*C2)  f32   skip connection, row-flattened NHWC
    a_ref : (NB*H, NB*H1)   bf16  block-diag row interpolation (+ top/bot pad)
    bc_ref: (W1*C1, W*C1)   bf16  column interp matrix (kron with eye(C1))
    w_ref : (3*W*Cin, W*Cm) bf16  kh-stacked Toeplitz conv weight slab
    b_ref : (1, W*Cm)       f32   conv1 bias tiled over W
    y_ref : (NB, H, W*Cm)   bf16  conv1 output (pre-BN), lane-dense
    st_ref: (1, 2, W*Cm)    f32   row0 = sum over rows, row1 = sum of squares
    """
    NB, H, WCm = y_ref.shape
    rows = NB * H

    # Bilinear upsample (+ implicit F.pad): cols+channels via Bc, rows via the
    # block-diagonal A (bf16 MXU, f32 accumulation).
    x1 = x1_ref[...].reshape(NB * x1_ref.shape[1], x1_ref.shape[2])
    t = jnp.dot(x1.astype(jnp.bfloat16), bc_ref[...],
                preferred_element_type=jnp.float32)
    x1u = jnp.dot(a_ref[...], t.astype(jnp.bfloat16),
                  preferred_element_type=jnp.float32)          # (rows, W*C1)
    x2 = x2_ref[...].reshape(rows, x2_ref.shape[2])            # (rows, W*C2)

    # torch.cat([x2, x1_up], dim=1) realized along the contraction axis.
    xc = jnp.concatenate([x2, x1u], axis=1)                    # (rows, W*Cin)
    X = _shifted_rows(xc, H).astype(jnp.bfloat16)              # (rows, 3*W*Cin)

    acc = jnp.dot(X, w_ref[...], preferred_element_type=jnp.float32)
    acc = acc + b_ref[...]

    y_ref[...] = acc.reshape(NB, H, WCm).astype(y_ref.dtype)
    s = jnp.sum(acc, axis=0, keepdims=True)
    q = jnp.sum(acc * acc, axis=0, keepdims=True)
    st_ref[...] = jnp.concatenate([s, q], axis=0)[None]


def _bn_relu_conv2_kernel(y1_ref, sc_ref, sh_ref, w_ref, b_ref,
                          y_ref, st_ref):
    """BN1 (scale/shift) + ReLU applied on the input read, then 3x3 conv2."""
    NB, H, WCo = y_ref.shape
    rows = NB * H

    a = y1_ref[...].reshape(rows, y1_ref.shape[2]).astype(jnp.float32)
    a = jnp.maximum(a * sc_ref[...] + sh_ref[...], 0.0)        # (rows, W*Cm)
    X = _shifted_rows(a, H).astype(jnp.bfloat16)               # (rows, 3*W*Cm)

    acc = jnp.dot(X, w_ref[...], preferred_element_type=jnp.float32)
    acc = acc + b_ref[...]

    y_ref[...] = acc.reshape(NB, H, WCo).astype(y_ref.dtype)
    s = jnp.sum(acc, axis=0, keepdims=True)
    q = jnp.sum(acc * acc, axis=0, keepdims=True)
    st_ref[...] = jnp.concatenate([s, q], axis=0)[None]


# ------------------------- wrapper-side weight prep --------------------------

def _interp_matrix(n_in, n_out):
    """nn.Upsample(mode='bilinear', align_corners=True) as a (n_out, n_in) matrix."""
    if n_in == 1:
        return jnp.ones((n_out, 1), jnp.float32)
    i = jnp.arange(n_out, dtype=jnp.float32)
    src = i * (n_in - 1) / max(n_out - 1, 1)
    i0 = jnp.clip(jnp.floor(src).astype(jnp.int32), 0, n_in - 2)
    frac = src - i0.astype(jnp.float32)
    rows = jnp.arange(n_out)
    m = jnp.zeros((n_out, n_in), jnp.float32)
    m = m.at[rows, i0].add(1.0 - frac)
    m = m.at[rows, i0 + 1].add(frac)
    return m


def _conv_row_matrices(w_hwio, W):
    """(3,3,Cin,Cout) conv weights -> (3, W*Cin, W*Cout) Toeplitz row matrices.

    M[kh][wi*Cin+ci, wo*Cout+co] = w[kh, wi-wo+1, ci, co]; zero where the tap
    falls outside the 3x3 kernel (this also encodes the left/right zero pad).
    """
    _, _, cin, cout = w_hwio.shape
    wi = jnp.arange(W)[:, None]
    wo = jnp.arange(W)[None, :]
    kw = wi - wo + 1
    valid = (kw >= 0) & (kw < 3)
    g = w_hwio[:, jnp.clip(kw, 0, 2)]                       # (3, W, W, Cin, Cout)
    g = jnp.where(valid[None, :, :, None, None], g, 0.0)
    return jnp.transpose(g, (0, 1, 3, 2, 4)).reshape(3, W * cin, W * cout)


def _bn_scale_shift(s, q, count, gamma, beta, eps=1e-5):
    """BatchNorm2d train mode: batch stats, biased variance (f32 throughout)."""
    mean = s / count
    var = jnp.maximum(q / count - mean * mean, 0.0)
    scale = gamma * jax.lax.rsqrt(var + eps)
    shift = beta - mean * scale
    return scale, shift


def _batch_blocks(N):
    """Grid blocks over the batch: v7x keeps a parallel axis (2 TensorCores),
    single-TC v5e/v6e collapse the batch into one big-M matmul."""
    kind = ""
    try:
        kind = jax.devices()[0].device_kind.lower()
    except Exception:
        pass
    if N % 2 == 0 and ("v7" in kind or "7x" in kind):
        return 2
    return 1


# ------------------------------ pallas_call wrappers -------------------------

def _conv1_call(x1f, x2f, a_big, bc_m, w_slab, b1t, nblk, H, WCm):
    N = x2f.shape[0]
    NB = N // nblk
    H1, W1C1 = x1f.shape[1], x1f.shape[2]
    WC2 = x2f.shape[2]
    WC1 = bc_m.shape[1]
    K = w_slab.shape[0]
    return pl.pallas_call(
        _up_conv1_kernel,
        out_shape=(
            jax.ShapeDtypeStruct((N, H, WCm), jnp.bfloat16),
            jax.ShapeDtypeStruct((nblk, 2, WCm), jnp.float32),
        ),
        grid=(nblk,),
        in_specs=[
            pl.BlockSpec((NB, H1, W1C1), lambda n: (n, 0, 0)),
            pl.BlockSpec((NB, H, WC2), lambda n: (n, 0, 0)),
            pl.BlockSpec((NB * H, NB * H1), lambda n: (0, 0)),
            pl.BlockSpec((W1C1, WC1), lambda n: (0, 0)),
            pl.BlockSpec((K, WCm), lambda n: (0, 0)),
            pl.BlockSpec((1, WCm), lambda n: (0, 0)),
        ],
        out_specs=(
            pl.BlockSpec((NB, H, WCm), lambda n: (n, 0, 0)),
            pl.BlockSpec((1, 2, WCm), lambda n: (n, 0, 0)),
        ),
        compiler_params=pltpu.CompilerParams(
            dimension_semantics=("parallel",)),
    )(x1f, x2f, a_big, bc_m, w_slab, b1t)


def _conv2_call(y1, sc1, sh1, w_slab, b2t, nblk, H, WCo):
    N, _, WCm = y1.shape
    NB = N // nblk
    K = w_slab.shape[0]
    return pl.pallas_call(
        _bn_relu_conv2_kernel,
        out_shape=(
            jax.ShapeDtypeStruct((N, H, WCo), jnp.float32),
            jax.ShapeDtypeStruct((nblk, 2, WCo), jnp.float32),
        ),
        grid=(nblk,),
        in_specs=[
            pl.BlockSpec((NB, H, WCm), lambda n: (n, 0, 0)),
            pl.BlockSpec((1, WCm), lambda n: (0, 0)),
            pl.BlockSpec((1, WCm), lambda n: (0, 0)),
            pl.BlockSpec((K, WCo), lambda n: (0, 0)),
            pl.BlockSpec((1, WCo), lambda n: (0, 0)),
        ],
        out_specs=(
            pl.BlockSpec((NB, H, WCo), lambda n: (n, 0, 0)),
            pl.BlockSpec((1, 2, WCo), lambda n: (n, 0, 0)),
        ),
        compiler_params=pltpu.CompilerParams(
            dimension_semantics=("parallel",)),
    )(y1, sc1, sh1, w_slab, b2t)


# ------------------------------- Up forward ----------------------------------

@jax.jit
def up_forward(x1_nchw, x2_nchw, params):
    (w1, b1, g1, be1), (w2, b2, g2, be2) = params
    N, c1, h1, w1sp = x1_nchw.shape
    _, c2, H, W = x2_nchw.shape
    cmid = w1.shape[-1]
    cout = w2.shape[-1]

    nblk = _batch_blocks(N)         # static (trace-time) per-generation choice
    NB = N // nblk

    # NCHW -> row-flattened NHWC: (N, H, W*C).
    x1f = jnp.transpose(x1_nchw, (0, 2, 3, 1)).reshape(N, h1, w1sp * c1)
    x2f = jnp.transpose(x2_nchw, (0, 2, 3, 1)).reshape(N, H, W * c2)

    # Bilinear (align_corners=True) x2 upsample + F.pad folded into matrices.
    h_up, w_up = 2 * h1, 2 * w1sp
    pad_t = (H - h_up) // 2
    pad_l = (W - w_up) // 2
    a_m = jnp.zeros((H, h1), jnp.float32).at[pad_t:pad_t + h_up, :].set(
        _interp_matrix(h1, h_up))
    b_m = jnp.zeros((W, w1sp), jnp.float32).at[pad_l:pad_l + w_up, :].set(
        _interp_matrix(w1sp, w_up))
    bc_m = jnp.kron(b_m.T, jnp.eye(c1, dtype=jnp.float32)).astype(jnp.bfloat16)
    # Block-diagonal over the NB batches handled by one grid block.
    a_big = jnp.kron(jnp.eye(NB, dtype=jnp.float32), a_m).astype(jnp.bfloat16)

    # conv1 weight slab: kh-stacked, per-kh [x2 channels ; upsampled-x1 channels]
    # (matches torch.cat([x2, x1_up], dim=1) via the contraction ordering).
    m2 = _conv_row_matrices(w1[:, :, :c2, :], W)          # (3, W*C2, W*Cm)
    m1 = _conv_row_matrices(w1[:, :, c2:, :], W)          # (3, W*C1, W*Cm)
    w1_slab = jnp.concatenate([m2, m1], axis=1).reshape(
        3 * W * (c1 + c2), W * cmid).astype(jnp.bfloat16)
    b1t = jnp.tile(b1, W).reshape(1, W * cmid)

    y1, st1 = _conv1_call(x1f, x2f, a_big, bc_m, w1_slab, b1t,
                          nblk, H, W * cmid)

    count = float(N * H * W)
    st1 = st1.sum(axis=0)                                 # (2, W*cmid), f32
    s1 = st1[0].reshape(W, cmid).sum(axis=0)
    q1 = st1[1].reshape(W, cmid).sum(axis=0)
    scale1, shift1 = _bn_scale_shift(s1, q1, count, g1, be1)
    sc1 = jnp.tile(scale1, W).reshape(1, W * cmid)
    sh1 = jnp.tile(shift1, W).reshape(1, W * cmid)

    w2_slab = _conv_row_matrices(w2, W).reshape(
        3 * W * cmid, W * cout).astype(jnp.bfloat16)
    b2t = jnp.tile(b2, W).reshape(1, W * cout)
    y2, st2 = _conv2_call(y1, sc1, sh1, w2_slab, b2t, nblk, H, W * cout)

    st2 = st2.sum(axis=0)
    s2 = st2[0].reshape(W, cout).sum(axis=0)
    q2 = st2[1].reshape(W, cout).sum(axis=0)
    scale2, shift2 = _bn_scale_shift(s2, q2, count, g2, be2)

    # BN2 + ReLU epilogue: plain JAX, fused by XLA into the NHWC->NCHW
    # transpose (no extra Pallas pass / HBM round-trip).
    out = jnp.maximum(y2.reshape(N, H, W, cout) * scale2 + shift2, 0.0)
    return jnp.transpose(out, (0, 3, 1, 2))


# ---------------------------- pure-JAX reference -----------------------------

def _upsample_bilinear_ac_ref(x_nchw):
    n, c, h, w = x_nchw.shape
    ho, wo = 2 * h, 2 * w

    def coords(n_in, n_out):
        i = jnp.arange(n_out, dtype=jnp.float32)
        src = i * (n_in - 1) / max(n_out - 1, 1)
        i0 = jnp.clip(jnp.floor(src).astype(jnp.int32), 0, max(n_in - 2, 0))
        frac = src - i0.astype(jnp.float32)
        return i0, frac

    r0, rf = coords(h, ho)
    c0, cf = coords(w, wo)
    top = x_nchw[:, :, r0, :]
    bot = x_nchw[:, :, jnp.minimum(r0 + 1, h - 1), :]
    xr = top * (1.0 - rf)[None, None, :, None] + bot * rf[None, None, :, None]
    left = xr[:, :, :, c0]
    right = xr[:, :, :, jnp.minimum(c0 + 1, w - 1)]
    return left * (1.0 - cf)[None, None, None, :] + right * cf[None, None, None, :]


def _ref_conv_bn_relu(x_nchw, w_hwio, bias, gamma, beta, eps=1e-5):
    w_oihw = jnp.transpose(w_hwio, (3, 2, 0, 1))
    y = jax.lax.conv_general_dilated(
        x_nchw, w_oihw, window_strides=(1, 1), padding=((1, 1), (1, 1)),
        dimension_numbers=("NCHW", "OIHW", "NCHW"))
    y = y + bias[None, :, None, None]
    mean = jnp.mean(y, axis=(0, 2, 3), keepdims=True)
    var = jnp.mean(jnp.square(y - mean), axis=(0, 2, 3), keepdims=True)
    y = (y - mean) * jax.lax.rsqrt(var + eps)
    y = y * gamma[None, :, None, None] + beta[None, :, None, None]
    return jnp.maximum(y, 0.0)


def up_forward_ref(x1_nchw, x2_nchw, params):
    (w1, b1, g1, be1), (w2, b2, g2, be2) = params
    x1u = _upsample_bilinear_ac_ref(x1_nchw)
    dy = x2_nchw.shape[2] - x1u.shape[2]
    dx = x2_nchw.shape[3] - x1u.shape[3]
    x1u = jnp.pad(x1u, ((0, 0), (0, 0),
                        (dy // 2, dy - dy // 2), (dx // 2, dx - dx // 2)))
    x = jnp.concatenate([x2_nchw, x1u], axis=1)
    x = _ref_conv_bn_relu(x, w1, b1, g1, be1)
    x = _ref_conv_bn_relu(x, w2, b2, g2, be2)
    return x


# ----------------------------------- main ------------------------------------

if __name__ == "__main__":
    key = jax.random.PRNGKey(0)
    # Up(in_channels=4, out_channels=8, bilinear=True):
    #   x1: (N, 2, 8, 8)  -> upsampled to (N, 2, 16, 16);  x2: (N, 2, 16, 16)
    #   concat -> 4 channels -> DoubleConv(4, 8)  (mid = out = 8)
    N = 2
    c1, c2 = 2, 2
    h1, w1sp = 8, 8
    H, W = 16, 16
    cin = c1 + c2
    cmid = cout = 8

    ks = jax.random.split(key, 10)
    x1 = jax.random.normal(ks[0], (N, c1, h1, w1sp), jnp.float32)
    x2 = jax.random.normal(ks[1], (N, c2, H, W), jnp.float32)

    w1 = 0.1 * jax.random.normal(ks[2], (3, 3, cin, cmid), jnp.float32)   # HWIO
    b1 = 0.1 * jax.random.normal(ks[3], (cmid,), jnp.float32)
    g1 = 1.0 + 0.1 * jax.random.normal(ks[4], (cmid,), jnp.float32)       # BN gamma
    be1 = 0.1 * jax.random.normal(ks[5], (cmid,), jnp.float32)            # BN beta

    w2 = 0.1 * jax.random.normal(ks[6], (3, 3, cmid, cout), jnp.float32)
    b2 = 0.1 * jax.random.normal(ks[7], (cout,), jnp.float32)
    g2 = 1.0 + 0.1 * jax.random.normal(ks[8], (cout,), jnp.float32)
    be2 = 0.1 * jax.random.normal(ks[9], (cout,), jnp.float32)

    params = ((w1, b1, g1, be1), (w2, b2, g2, be2))

    out = up_forward(x1, x2, params)
    out = jax.block_until_ready(out)

    ref = up_forward_ref(x1, x2, params)
    assert out.shape == (N, cout, H, W)
    # Tolerance reflects bf16 MXU operands / bf16 inter-layer activation
    # (accumulation and BN statistics are kept in f32).
    assert jnp.allclose(out, ref, rtol=5e-2, atol=5e-2), (
        float(jnp.max(jnp.abs(out - ref))))

    print("KERNEL_OK")
</pallas_src>

<mosaic_0001>
module attributes {stable_mosaic.version = 11 : i64} {
  func.func @_up_conv1_kernel(%arg0: i32, %arg1: memref<2x8x16xf32, #tpu.memory_space<vmem>>, %arg2: memref<2x16x32xf32, #tpu.memory_space<vmem>>, %arg3: memref<32x16xbf16, #tpu.memory_space<vmem>>, %arg4: memref<16x32xbf16, #tpu.memory_space<vmem>>, %arg5: memref<192x128xbf16, #tpu.memory_space<vmem>>, %arg6: memref<1x128xf32, #tpu.memory_space<vmem>>, %arg7: memref<2x16x128xbf16, #tpu.memory_space<vmem>>, %arg8: memref<1x2x128xf32, #tpu.memory_space<vmem>>) attributes {dimension_semantics = [#tpu.dimension_semantics<parallel>], iteration_bounds = array<i64: 1>, scalar_prefetch = 0 : i64, scratch_operands = 0 : i64, tpu.core_type = #tpu.core_type<tc>, window_params = [{transform_indices = @transform_0, window_bounds = array<i64: 2, 8, 16>}, {transform_indices = @transform_1, window_bounds = array<i64: 2, 16, 32>}, {pipeline_mode = #tpu.pipeline_mode<synchronous>, transform_indices = @transform_2, window_bounds = array<i64: 32, 16>}, {pipeline_mode = #tpu.pipeline_mode<synchronous>, transform_indices = @transform_3, window_bounds = array<i64: 16, 32>}, {pipeline_mode = #tpu.pipeline_mode<synchronous>, transform_indices = @transform_4, window_bounds = array<i64: 192, 128>}, {pipeline_mode = #tpu.pipeline_mode<synchronous>, transform_indices = @transform_5, window_bounds = array<i64: 1, 128>}, {transform_indices = @transform_6, window_bounds = array<i64: 2, 16, 128>}, {transform_indices = @transform_7, window_bounds = array<i64: 1, 2, 128>}]} {
    %c0 = arith.constant 0 : index
    %c0_0 = arith.constant 0 : index
    %c0_1 = arith.constant 0 : index
    %0 = vector.load %arg1[%c0, %c0_0, %c0_1] : memref<2x8x16xf32, #tpu.memory_space<vmem>>, vector<2x8x16xf32>
    %1 = vector.shape_cast %0 : vector<2x8x16xf32> to vector<16x16xf32>
    %2 = arith.truncf %1 : vector<16x16xf32> to vector<16x16xbf16>
    %c0_2 = arith.constant 0 : index
    %c0_3 = arith.constant 0 : index
    %3 = vector.load %arg4[%c0_2, %c0_3] : memref<16x32xbf16, #tpu.memory_space<vmem>>, vector<16x32xbf16>
    %cst = arith.constant dense<0.000000e+00> : vector<16x32xf32>
    %4 = tpu.matmul %2, %3, %cst {dimension_numbers = #tpu.dot_dimension_numbers<[1], [0], [0], [1], [0, 0, 1, 1], [], []>} : vector<16x16xbf16>, vector<16x32xbf16>, vector<16x32xf32> -> vector<16x32xf32>
    %c0_4 = arith.constant 0 : index
    %c0_5 = arith.constant 0 : index
    %5 = vector.load %arg3[%c0_4, %c0_5] : memref<32x16xbf16, #tpu.memory_space<vmem>>, vector<32x16xbf16>
    %6 = arith.truncf %4 : vector<16x32xf32> to vector<16x32xbf16>
    %cst_6 = arith.constant dense<0.000000e+00> : vector<32x32xf32>
    %7 = tpu.matmul %5, %6, %cst_6 {dimension_numbers = #tpu.dot_dimension_numbers<[1], [0], [0], [1], [0, 0, 1, 1], [], []>} : vector<32x16xbf16>, vector<16x32xbf16>, vector<32x32xf32> -> vector<32x32xf32>
    %c0_7 = arith.constant 0 : index
    %c0_8 = arith.constant 0 : index
    %c0_9 = arith.constant 0 : index
    %8 = vector.load %arg2[%c0_7, %c0_8, %c0_9] : memref<2x16x32xf32, #tpu.memory_space<vmem>>, vector<2x16x32xf32>
    %9 = vector.shape_cast %8 : vector<2x16x32xf32> to vector<32x32xf32>
    %10 = tpu.concatenate %9, %7 in 1 : vector<32x32xf32>, vector<32x32xf32> -> vector<32x64xf32>
    %cst_10 = arith.constant 0.000000e+00 : f32
    %11 = vector.broadcast %cst_10 : f32 to vector<1x64xf32>
    %12 = vector.extract_strided_slice %10 {offsets = [0, 0], sizes = [31, 64], strides = [1, 1]} : vector<32x64xf32> to vector<31x64xf32>
    %13 = tpu.concatenate %11, %12 in 0 : vector<1x64xf32>, vector<31x64xf32> -> vector<32x64xf32>
    %14 = vector.extract_strided_slice %10 {offsets = [1, 0], sizes = [31, 64], strides = [1, 1]} : vector<32x64xf32> to vector<31x64xf32>
    %15 = tpu.concatenate %14, %11 in 0 : vector<31x64xf32>, vector<1x64xf32> -> vector<32x64xf32>
    %16 = tpu.iota {dimensions = array<i32: 0>} : vector<32x64xi32>
    %c16_i32 = arith.constant 16 : i32
    %c0_i32 = arith.constant 0 : i32
    %17 = arith.cmpi eq, %c16_i32, %c0_i32 : i32
    %c1_i32 = arith.constant 1 : i32
    %18 = arith.select %17, %c1_i32, %c16_i32 : i32
    %19 = vector.broadcast %18 : i32 to vector<32x64xi32>
    %20 = arith.remsi %16, %19 : vector<32x64xi32>
    %c0_i32_11 = arith.constant 0 : i32
    %21 = vector.broadcast %c0_i32_11 : i32 to vector<32x64xi32>
    %22 = arith.cmpi ne, %20, %21 : vector<32x64xi32>
    %c0_i32_12 = arith.constant 0 : i32
    %23 = vector.broadcast %c0_i32_12 : i32 to vector<32x64xi32>
    %24 = arith.cmpi slt, %20, %23 : vector<32x64xi32>
    %c0_i32_13 = arith.constant 0 : i32
    %25 = arith.cmpi slt, %18, %c0_i32_13 : i32
    %26 = vector.broadcast %25 : i1 to vector<32x64xi1>
    %27 = vector.broadcast %26 : vector<32x64xi1> to vector<32x64xi1>
    %28 = arith.xori %24, %27 : vector<32x64xi1>
    %29 = arith.andi %28, %22 : vector<32x64xi1>
    %30 = vector.broadcast %18 : i32 to vector<32x64xi32>
    %31 = arith.addi %20, %30 : vector<32x64xi32>
    %32 = arith.select %29, %31, %20 : vector<32x64xi1>, vector<32x64xi32>
    %c0_i32_14 = arith.constant 0 : i32
    %33 = vector.broadcast %c0_i32_14 : i32 to vector<32x64xi32>
    %34 = arith.cmpi eq, %32, %33 : vector<32x64xi32>
    %cst_15 = arith.constant 0.000000e+00 : f32
    %35 = vector.broadcast %cst_15 : f32 to vector<32x64xf32>
    %36 = arith.select %34, %35, %13 : vector<32x64xi1>, vector<32x64xf32>
    %c15_i32 = arith.constant 15 : i32
    %37 = vector.broadcast %c15_i32 : i32 to vector<32x64xi32>
    %38 = arith.cmpi eq, %32, %37 : vector<32x64xi32>
    %cst_16 = arith.constant 0.000000e+00 : f32
    %39 = vector.broadcast %cst_16 : f32 to vector<32x64xf32>
    %40 = arith.select %38, %39, %15 : vector<32x64xi1>, vector<32x64xf32>
    %41 = tpu.concatenate %36, %10, %40 in 1 : vector<32x64xf32>, vector<32x64xf32>, vector<32x64xf32> -> vector<32x192xf32>
    %42 = arith.truncf %41 : vector<32x192xf32> to vector<32x192xbf16>
    %c0_17 = arith.constant 0 : index
    %c0_18 = arith.constant 0 : index
    %43 = vector.load %arg5[%c0_17, %c0_18] : memref<192x128xbf16, #tpu.memory_space<vmem>>, vector<192x128xbf16>
    %cst_19 = arith.constant dense<0.000000e+00> : vector<32x128xf32>
    %44 = tpu.matmul %42, %43, %cst_19 {dimension_numbers = #tpu.dot_dimension_numbers<[1], [0], [0], [1], [0, 0, 1, 1], [], []>} : vector<32x192xbf16>, vector<192x128xbf16>, vector<32x128xf32> -> vector<32x128xf32>
    %c0_20 = arith.constant 0 : index
    %c0_21 = arith.constant 0 : index
    %45 = vector.load %arg6[%c0_20, %c0_21] : memref<1x128xf32, #tpu.memory_space<vmem>>, vector<1x128xf32>
    %46 = vector.broadcast %45 : vector<1x128xf32> to vector<32x128xf32>
    %47 = arith.addf %44, %46 : vector<32x128xf32>
    %48 = vector.shape_cast %47 : vector<32x128xf32> to vector<2x16x128xf32>
    %49 = arith.truncf %48 : vector<2x16x128xf32> to vector<2x16x128xbf16>
    %c0_22 = arith.constant 0 : index
    %c0_23 = arith.constant 0 : index
    %c0_24 = arith.constant 0 : index
    %50 = vector.load %arg7[%c0_22, %c0_23, %c0_24] : memref<2x16x128xbf16, #tpu.memory_space<vmem>>, vector<2x16x128xbf16>
    tpu.vector_store %arg7[%c0_22, %c0_23, %c0_24], %49 {strides = array<i32>} : memref<2x16x128xbf16, #tpu.memory_space<vmem>>, vector<2x16x128xbf16>,
    %cst_25 = arith.constant dense<0.000000e+00> : vector<128xf32>
    %51 = vector.multi_reduction <add>, %47, %cst_25 [0] : vector<32x128xf32> to vector<128xf32>
    %52 = vector.shape_cast %51 : vector<128xf32> to vector<1x128xf32>
    %53 = arith.mulf %47, %47 : vector<32x128xf32>
    %cst_26 = arith.constant dense<0.000000e+00> : vector<128xf32>
    %54 = vector.multi_reduction <add>, %53, %cst_26 [0] : vector<32x128xf32> to vector<128xf32>
    %55 = vector.shape_cast %54 : vector<128xf32> to vector<1x128xf32>
    %56 = tpu.concatenate %52, %55 in 0 : vector<1x128xf32>, vector<1x128xf32> -> vector<2x128xf32>
    %57 = vector.shape_cast %56 : vector<2x128xf32> to vector<1x2x128xf32>
    %c0_27 = arith.constant 0 : index
    %c0_28 = arith.constant 0 : index
    %c0_29 = arith.constant 0 : index
    %58 = vector.load %arg8[%c0_27, %c0_28, %c0_29] : memref<1x2x128xf32, #tpu.memory_space<vmem>>, vector<1x2x128xf32>
    tpu.vector_store %arg8[%c0_27, %c0_28, %c0_29], %57 {strides = array<i32>} : memref<1x2x128xf32, #tpu.memory_space<vmem>>, vector<1x2x128xf32>,
    return
  }
  func.func @transform_0(%arg0: i32) -> (i32, i32, i32) {
    %c0_i32 = arith.constant 0 : i32
    %c0_i32_0 = arith.constant 0 : i32
    %c0_i32_1 = arith.constant 0 : i32
    return %arg0, %c0_i32, %c0_i32_0 : i32, i32, i32
  }
  func.func @transform_1(%arg0: i32) -> (i32, i32, i32) {
    %c0_i32 = arith.constant 0 : i32
    %c0_i32_0 = arith.constant 0 : i32
    %c0_i32_1 = arith.constant 0 : i32
    return %arg0, %c0_i32, %c0_i32_0 : i32, i32, i32
  }
  func.func @transform_2(%arg0: i32) -> (i32, i32) {
    %c0_i32 = arith.constant 0 : i32
    %c0_i32_0 = arith.constant 0 : i32
    %c0_i32_1 = arith.constant 0 : i32
    return %c0_i32, %c0_i32_0 : i32, i32
  }
  func.func @transform_3(%arg0: i32) -> (i32, i32) {
    %c0_i32 = arith.constant 0 : i32
    %c0_i32_0 = arith.constant 0 : i32
    %c0_i32_1 = arith.constant 0 : i32
    return %c0_i32, %c0_i32_0 : i32, i32
  }
  func.func @transform_4(%arg0: i32) -> (i32, i32) {
    %c0_i32 = arith.constant 0 : i32
    %c0_i32_0 = arith.constant 0 : i32
    %c0_i32_1 = arith.constant 0 : i32
    return %c0_i32, %c0_i32_0 : i32, i32
  }
  func.func @transform_5(%arg0: i32) -> (i32, i32) {
    %c0_i32 = arith.constant 0 : i32
    %c0_i32_0 = arith.constant 0 : i32
    %c0_i32_1 = arith.constant 0 : i32
    return %c0_i32, %c0_i32_0 : i32, i32
  }
  func.func @transform_6(%arg0: i32) -> (i32, i32, i32) {
    %c0_i32 = arith.constant 0 : i32
    %c0_i32_0 = arith.constant 0 : i32
    %c0_i32_1 = arith.constant 0 : i32
    return %arg0, %c0_i32, %c0_i32_0 : i32, i32, i32
  }
  func.func @transform_7(%arg0: i32) -> (i32, i32, i32) {
    %c0_i32 = arith.constant 0 : i32
    %c0_i32_0 = arith.constant 0 : i32
    %c0_i32_1 = arith.constant 0 : i32
    return %arg0, %c0_i32, %c0_i32_0 : i32, i32, i32
  }
}

module attributes {stable_mosaic.version = 11 : i64} {
  func.func @_bn_relu_conv2_kernel(%arg0: i32, %arg1: memref<2x16x128xbf16, #tpu.memory_space<vmem>>, %arg2: memref<1x128xf32, #tpu.memory_space<vmem>>, %arg3: memref<1x128xf32, #tpu.memory_space<vmem>>, %arg4: memref<384x128xbf16, #tpu.memory_space<vmem>>, %arg5: memref<1x128xf32, #tpu.memory_space<vmem>>, %arg6: memref<2x16x128xf32, #tpu.memory_space<vmem>>, %arg7: memref<1x2x128xf32, #tpu.memory_space<vmem>>) attributes {dimension_semantics = [#tpu.dimension_semantics<parallel>], iteration_bounds = array<i64: 1>, scalar_prefetch = 0 : i64, scratch_operands = 0 : i64, tpu.core_type = #tpu.core_type<tc>, window_params = [{transform_indices = @transform_0, window_bounds = array<i64: 2, 16, 128>}, {pipeline_mode = #tpu.pipeline_mode<synchronous>, transform_indices = @transform_1, window_bounds = array<i64: 1, 128>}, {pipeline_mode = #tpu.pipeline_mode<synchronous>, transform_indices = @transform_2, window_bounds = array<i64: 1, 128>}, {pipeline_mode = #tpu.pipeline_mode<synchronous>, transform_indices = @transform_3, window_bounds = array<i64: 384, 128>}, {pipeline_mode = #tpu.pipeline_mode<synchronous>, transform_indices = @transform_4, window_bounds = array<i64: 1, 128>}, {transform_indices = @transform_5, window_bounds = array<i64: 2, 16, 128>}, {transform_indices = @transform_6, window_bounds = array<i64: 1, 2, 128>}]} {
    %c0 = arith.constant 0 : index
    %c0_0 = arith.constant 0 : index
    %c0_1 = arith.constant 0 : index
    %0 = vector.load %arg1[%c0, %c0_0, %c0_1] : memref<2x16x128xbf16, #tpu.memory_space<vmem>>, vector<2x16x128xbf16>
    %1 = vector.shape_cast %0 : vector<2x16x128xbf16> to vector<32x128xbf16>
    %2 = arith.extf %1 : vector<32x128xbf16> to vector<32x128xf32>
    %c0_2 = arith.constant 0 : index
    %c0_3 = arith.constant 0 : index
    %3 = vector.load %arg2[%c0_2, %c0_3] : memref<1x128xf32, #tpu.memory_space<vmem>>, vector<1x128xf32>
    %4 = vector.broadcast %3 : vector<1x128xf32> to vector<32x128xf32>
    %5 = arith.mulf %2, %4 : vector<32x128xf32>
    %c0_4 = arith.constant 0 : index
    %c0_5 = arith.constant 0 : index
    %6 = vector.load %arg3[%c0_4, %c0_5] : memref<1x128xf32, #tpu.memory_space<vmem>>, vector<1x128xf32>
    %7 = vector.broadcast %6 : vector<1x128xf32> to vector<32x128xf32>
    %8 = arith.addf %5, %7 : vector<32x128xf32>
    %cst = arith.constant 0.000000e+00 : f32
    %9 = vector.broadcast %cst : f32 to vector<32x128xf32>
    %10 = arith.maximumf %8, %9 : vector<32x128xf32>
    %cst_6 = arith.constant 0.000000e+00 : f32
    %11 = vector.broadcast %cst_6 : f32 to vector<1x128xf32>
    %12 = vector.extract_strided_slice %10 {offsets = [0, 0], sizes = [31, 128], strides = [1, 1]} : vector<32x128xf32> to vector<31x128xf32>
    %13 = tpu.concatenate %11, %12 in 0 : vector<1x128xf32>, vector<31x128xf32> -> vector<32x128xf32>
    %14 = vector.extract_strided_slice %10 {offsets = [1, 0], sizes = [31, 128], strides = [1, 1]} : vector<32x128xf32> to vector<31x128xf32>
    %15 = tpu.concatenate %14, %11 in 0 : vector<31x128xf32>, vector<1x128xf32> -> vector<32x128xf32>
    %16 = tpu.iota {dimensions = array<i32: 0>} : vector<32x128xi32>
    %c16_i32 = arith.constant 16 : i32
    %c0_i32 = arith.constant 0 : i32
    %17 = arith.cmpi eq, %c16_i32, %c0_i32 : i32
    %c1_i32 = arith.constant 1 : i32
    %18 = arith.select %17, %c1_i32, %c16_i32 : i32
    %19 = vector.broadcast %18 : i32 to vector<32x128xi32>
    %20 = arith.remsi %16, %19 : vector<32x128xi32>
    %c0_i32_7 = arith.constant 0 : i32
    %21 = vector.broadcast %c0_i32_7 : i32 to vector<32x128xi32>
    %22 = arith.cmpi ne, %20, %21 : vector<32x128xi32>
    %c0_i32_8 = arith.constant 0 : i32
    %23 = vector.broadcast %c0_i32_8 : i32 to vector<32x128xi32>
    %24 = arith.cmpi slt, %20, %23 : vector<32x128xi32>
    %c0_i32_9 = arith.constant 0 : i32
    %25 = arith.cmpi slt, %18, %c0_i32_9 : i32
    %26 = vector.broadcast %25 : i1 to vector<32x128xi1>
    %27 = vector.broadcast %26 : vector<32x128xi1> to vector<32x128xi1>
    %28 = arith.xori %24, %27 : vector<32x128xi1>
    %29 = arith.andi %28, %22 : vector<32x128xi1>
    %30 = vector.broadcast %18 : i32 to vector<32x128xi32>
    %31 = arith.addi %20, %30 : vector<32x128xi32>
    %32 = arith.select %29, %31, %20 : vector<32x128xi1>, vector<32x128xi32>
    %c0_i32_10 = arith.constant 0 : i32
    %33 = vector.broadcast %c0_i32_10 : i32 to vector<32x128xi32>
    %34 = arith.cmpi eq, %32, %33 : vector<32x128xi32>
    %cst_11 = arith.constant 0.000000e+00 : f32
    %35 = vector.broadcast %cst_11 : f32 to vector<32x128xf32>
    %36 = arith.select %34, %35, %13 : vector<32x128xi1>, vector<32x128xf32>
    %c15_i32 = arith.constant 15 : i32
    %37 = vector.broadcast %c15_i32 : i32 to vector<32x128xi32>
    %38 = arith.cmpi eq, %32, %37 : vector<32x128xi32>
    %cst_12 = arith.constant 0.000000e+00 : f32
    %39 = vector.broadcast %cst_12 : f32 to vector<32x128xf32>
    %40 = arith.select %38, %39, %15 : vector<32x128xi1>, vector<32x128xf32>
    %41 = tpu.concatenate %36, %10, %40 in 1 : vector<32x128xf32>, vector<32x128xf32>, vector<32x128xf32> -> vector<32x384xf32>
    %42 = arith.truncf %41 : vector<32x384xf32> to vector<32x384xbf16>
    %c0_13 = arith.constant 0 : index
    %c0_14 = arith.constant 0 : index
    %43 = vector.load %arg4[%c0_13, %c0_14] : memref<384x128xbf16, #tpu.memory_space<vmem>>, vector<384x128xbf16>
    %cst_15 = arith.constant dense<0.000000e+00> : vector<32x128xf32>
    %44 = tpu.matmul %42, %43, %cst_15 {dimension_numbers = #tpu.dot_dimension_numbers<[1], [0], [0], [1], [0, 0, 1, 1], [], []>} : vector<32x384xbf16>, vector<384x128xbf16>, vector<32x128xf32> -> vector<32x128xf32>
    %c0_16 = arith.constant 0 : index
    %c0_17 = arith.constant 0 : index
    %45 = vector.load %arg5[%c0_16, %c0_17] : memref<1x128xf32, #tpu.memory_space<vmem>>, vector<1x128xf32>
    %46 = vector.broadcast %45 : vector<1x128xf32> to vector<32x128xf32>
    %47 = arith.addf %44, %46 : vector<32x128xf32>
    %48 = vector.shape_cast %47 : vector<32x128xf32> to vector<2x16x128xf32>
    %c0_18 = arith.constant 0 : index
    %c0_19 = arith.constant 0 : index
    %c0_20 = arith.constant 0 : index
    %49 = vector.load %arg6[%c0_18, %c0_19, %c0_20] : memref<2x16x128xf32, #tpu.memory_space<vmem>>, vector<2x16x128xf32>
    tpu.vector_store %arg6[%c0_18, %c0_19, %c0_20], %48 {strides = array<i32>} : memref<2x16x128xf32, #tpu.memory_space<vmem>>, vector<2x16x128xf32>,
    %cst_21 = arith.constant dense<0.000000e+00> : vector<128xf32>
    %50 = vector.multi_reduction <add>, %47, %cst_21 [0] : vector<32x128xf32> to vector<128xf32>
    %51 = vector.shape_cast %50 : vector<128xf32> to vector<1x128xf32>
    %52 = arith.mulf %47, %47 : vector<32x128xf32>
    %cst_22 = arith.constant dense<0.000000e+00> : vector<128xf32>
    %53 = vector.multi_reduction <add>, %52, %cst_22 [0] : vector<32x128xf32> to vector<128xf32>
    %54 = vector.shape_cast %53 : vector<128xf32> to vector<1x128xf32>
    %55 = tpu.concatenate %51, %54 in 0 : vector<1x128xf32>, vector<1x128xf32> -> vector<2x128xf32>
    %56 = vector.shape_cast %55 : vector<2x128xf32> to vector<1x2x128xf32>
    %c0_23 = arith.constant 0 : index
    %c0_24 = arith.constant 0 : index
    %c0_25 = arith.constant 0 : index
    %57 = vector.load %arg7[%c0_23, %c0_24, %c0_25] : memref<1x2x128xf32, #tpu.memory_space<vmem>>, vector<1x2x128xf32>
    tpu.vector_store %arg7[%c0_23, %c0_24, %c0_25], %56 {strides = array<i32>} : memref<1x2x128xf32, #tpu.memory_space<vmem>>, vector<1x2x128xf32>,
    return
  }
  func.func @transform_0(%arg0: i32) -> (i32, i32, i32) {
    %c0_i32 = arith.constant 0 : i32
    %c0_i32_0 = arith.constant 0 : i32
    %c0_i32_1 = arith.constant 0 : i32
    return %arg0, %c0_i32, %c0_i32_0 : i32, i32, i32
  }
  func.func @transform_1(%arg0: i32) -> (i32, i32) {
    %c0_i32 = arith.constant 0 : i32
    %c0_i32_0 = arith.constant 0 : i32
    %c0_i32_1 = arith.constant 0 : i32
    return %c0_i32, %c0_i32_0 : i32, i32
  }
  func.func @transform_2(%arg0: i32) -> (i32, i32) {
    %c0_i32 = arith.constant 0 : i32
    %c0_i32_0 = arith.constant 0 : i32
    %c0_i32_1 = arith.constant 0 : i32
    return %c0_i32, %c0_i32_0 : i32, i32
  }
  func.func @transform_3(%arg0: i32) -> (i32, i32) {
    %c0_i32 = arith.constant 0 : i32
    %c0_i32_0 = arith.constant 0 : i32
    %c0_i32_1 = arith.constant 0 : i32
    return %c0_i32, %c0_i32_0 : i32, i32
  }
  func.func @transform_4(%arg0: i32) -> (i32, i32) {
    %c0_i32 = arith.constant 0 : i32
    %c0_i32_0 = arith.constant 0 : i32
    %c0_i32_1 = arith.constant 0 : i32
    return %c0_i32, %c0_i32_0 : i32, i32
  }
  func.func @transform_5(%arg0: i32) -> (i32, i32, i32) {
    %c0_i32 = arith.constant 0 : i32
    %c0_i32_0 = arith.constant 0 : i32
    %c0_i32_1 = arith.constant 0 : i32
    return %arg0, %c0_i32, %c0_i32_0 : i32, i32, i32
  }
  func.func @transform_6(%arg0: i32) -> (i32, i32, i32) {
    %c0_i32 = arith.constant 0 : i32
    %c0_i32_0 = arith.constant 0 : i32
    %c0_i32_1 = arith.constant 0 : i32
    return %arg0, %c0_i32, %c0_i32_0 : i32, i32, i32
  }
}

</mosaic_0001>

<bundles_post_ra>
// kernel: tile.23
= control target key start
LH: loop header
LB: loop body
LE: loop exit
PB: predicated region body
PF: predicated region fallthrough
CT: control target
= control target key end

     0   :  { %s28_s0 = inlined_call_operand.vmem [shape: f32[8], index: 0, kind: input, shape index: {}]   ;;  %s29_s1 = inlined_call_operand.vmem [shape: f32[16,8], index: 1, kind: output, shape index: {}]  }
   0x1   :  { %v4_v0 = vld [vmem:[%s28_s0] ss:$0 sm:$0xff] }
   0x2   :  { %5 = vst [vmem:[%s29_s1] sm:$0xff] %v4_v0 }
   0x3   :  { %8 = vst [vmem:[%s29_s1 + $0x8] sm:$0xff] %v4_v0 }

// kernel: tile.24
= control target key start
LH: loop header
LB: loop body
LE: loop exit
PB: predicated region body
PF: predicated region fallthrough
CT: control target
= control target key end

     0   :  { %s131_s10 = smov 120   ;;  %s132_s11 = smov 104   ;;  %vm3_vm0 = vcmask 64512   ;;  %vm9_vm1 = vcmask 1048512   ;;  %vm15_vm2 = vcmask 982912   ;;  %vm21_vm3 = vcmask 917312   ;;  %s207_s0 = inlined_call_operand.vmem [shape: f32[16,8], index: 0, kind: input, shape index: {}]   ;;  %s208_s1 = inlined_call_operand.vmem [shape: f32[1,128], index: 1, kind: output, shape index: {}]  }
   0x1   :  { %v101_v0 = vld [vmem:[%s207_s0 + $0xf] sm:$0x1]   ;;  %v103_v1 = vld [vmem:[%s207_s0 + $0xd] sm:$0x1]   ;;  %v105_v2 = vld [vmem:[%s207_s0 + $0xb] sm:$0x1]  }
   0x2   :  { %7 = vrot.lane.b32.xlu0 %v101_v0, %s131_s10  ;;  %19 = vrot.lane.b32.xlu1 %v103_v1, %s132_s11  ;;  %s133_s14 = smov 88   ;;  %v102_v3 = vld [vmem:[%s207_s0 + $0xe] sm:$0x1]   ;;  %v104_v4 = vld [vmem:[%s207_s0 + $0xc] sm:$0x1]   ;;  %s134_s19 = smov 112  }
   0x3   :  { %31 = vrot.lane.b32.xlu2 %v105_v2, %s133_s14  ;;  %s135_s20 = smov 96   ;;  %v106_v5 = vld [vmem:[%s207_s0 + $0xa] sm:$0x1]   ;;  %s136_s23 = smov 80   ;;  %v107_v6 = vld [vmem:[%s207_s0 + $0x9] sm:$0x1]  }
   0x4   :  { %v108_v7 = vld [vmem:[%s207_s0 + $0x8] sm:$0x1]   ;;  %s137_s28 = smov 72   ;;  %s138_s29 = smov 64   ;;  %v109_v8 = vld [vmem:[%s207_s0 + $0x7] sm:$0x1]  }
   0x5   :  { %s139_s3 = smov 56   ;;  %v110_v9 = vld [vmem:[%s207_s0 + $0x6] sm:$0x1]   ;;  %v111_v10 = vld [vmem:[%s207_s0 + $0x5] sm:$0x1]   ;;  %s140_s8 = smov 48  }
   0x6   :  { %s141_s9 = smov 40   ;;  %v112_v11 = vld [vmem:[%s207_s0 + $0x4] sm:$0x1]   ;;  %s142_s12 = smov 32   ;;  %v113_v12 = vld [vmem:[%s207_s0 + $0x3] sm:$0x1]  }
   0x7   :  { %v114_v13 = vld [vmem:[%s207_s0 + $0x2] sm:$0x1]   ;;  %s143_s17 = smov 24   ;;  %s144_s18 = smov 16   ;;  %v115_v14 = vld [vmem:[%s207_s0 + $0x1] sm:$0x1]  }
   0x8   :  { %s145_s21 = smov 8   ;;  %v2_v15 = vld [vmem:[%s207_s0] sm:$0x1]   ;;  %vm27_vm4 = vcmask 851712   ;;  %vm33_vm5 = vcmask 786112   ;;  %vm39_vm6 = vcmask 720512  }
   0x9   :  { %4 = vst.msk [vmem:[#allocation0] sm:$0x1] %vm3_vm0, %v2_v15   ;;  %vm45_vm7 = vcmask 654912   ;;  %vm51_vm8 = vcmask 589312   ;;  %vm57_vm9 = vcmask 523712   ;;  %vm63_vm10 = vcmask 458112  }
   0xa   :  { %13 = vrot.lane.b32.xlu0 %v102_v3, %s134_s19  ;;  %25 = vrot.lane.b32.xlu1 %v104_v4, %s135_s20  ;;  %vm69_vm11 = vcmask 392512   ;;  %vm75_vm12 = vcmask 326912   ;;  %vm81_vm13 = vcmask 261312   ;;  %vm87_vm14 = vcmask 195712  }
   0xb   :  { %37 = vrot.lane.b32.xlu2 %v106_v5, %s136_s23  ;;  %vm93_vm15 = vcmask 130112  }
  0x12   :  { %43 = vrot.lane.b32.xlu0 %v107_v6, %s137_s28  ;;  %49 = vrot.lane.b32.xlu1 %v108_v7, %s138_s29 }
  0x13   :  { %55 = vrot.lane.b32.xlu2 %v109_v8, %s139_s3 }
  0x1a   :  { %61 = vrot.lane.b32.xlu0 %v110_v9, %s140_s8  ;;  %67 = vrot.lane.b32.xlu1 %v111_v10, %s141_s9 }
  0x1b   :  { %73 = vrot.lane.b32.xlu2 %v112_v11, %s142_s12 }
  0x22   :  { %79 = vrot.lane.b32.xlu0 %v113_v12, %s143_s17  ;;  %85 = vrot.lane.b32.xlu1 %v114_v13, %s144_s18 }
  0x23   :  { %91 = vrot.lane.b32.xlu2 %v115_v14, %s145_s21 }
  0x5d   :  { %v32_v16 = vpop.permute.xlu2 %31  }
  0x65   :  { %v38_v17 = vpop.permute.xlu2 %37  }
  0x6d   :  { %v56_v18 = vpop.permute.xlu2 %55  }
  0x74   :  { %v8_v19 = vpop.permute.xlu0 %7   ;;  %v20_v20 = vpop.permute.xlu1 %19  }
  0x75   :  { %10 = vst.msk [vmem:[#allocation0] sm:$0x1] %vm9_vm1, %v8_v19   ;;  %v74_v21 = vpop.permute.xlu2 %73  }
  0x7c   :  { %v14_v22 = vpop.permute.xlu0 %13   ;;  %v26_v23 = vpop.permute.xlu1 %25  }
  0x7d   :  { %16 = vst.msk [vmem:[#allocation0] sm:$0x1] %vm15_vm2, %v14_v22   ;;  %v92_v24 = vpop.permute.xlu2 %91  }
  0x7e   :  { %22 = vst.msk [vmem:[#allocation0] sm:$0x1] %vm21_vm3, %v20_v20  }
  0x7f   :  { %28 = vst.msk [vmem:[#allocation0] sm:$0x1] %vm27_vm4, %v26_v23  }
  0x80   :  { %34 = vst.msk [vmem:[#allocation0] sm:$0x1] %vm33_vm5, %v32_v16  }
  0x81   :  { %40 = vst.msk [vmem:[#allocation0] sm:$0x1] %vm39_vm6, %v38_v17  }
  0x84   :  { %v44_v25 = vpop.permute.xlu0 %43   ;;  %v50_v26 = vpop.permute.xlu1 %49  }
  0x85   :  { %46 = vst.msk [vmem:[#allocation0] sm:$0x1] %vm45_vm7, %v44_v25  }
  0x86   :  { %52 = vst.msk [vmem:[#allocation0] sm:$0x1] %vm51_vm8, %v50_v26  }
  0x87   :  { %58 = vst.msk [vmem:[#allocation0] sm:$0x1] %vm57_vm9, %v56_v18  }
  0x8c   :  { %v62_v27 = vpop.permute.xlu0 %61   ;;  %v68_v28 = vpop.permute.xlu1 %67  }
  0x8d   :  { %64 = vst.msk [vmem:[#allocation0] sm:$0x1] %vm63_vm10, %v62_v27  }
  0x8e   :  { %70 = vst.msk [vmem:[#allocation0] sm:$0x1] %vm69_vm11, %v68_v28  }
  0x8f   :  { %76 = vst.msk [vmem:[#allocation0] sm:$0x1] %vm75_vm12, %v74_v21  }
  0x94   :  { %v80_v29 = vpop.permute.xlu0 %79   ;;  %v86_v30 = vpop.permute.xlu1 %85  }
  0x95   :  { %82 = vst.msk [vmem:[#allocation0] sm:$0x1] %vm81_vm13, %v80_v29  }
  0x96   :  { %88 = vst.msk [vmem:[#allocation0] sm:$0x1] %vm87_vm14, %v86_v30  }
  0x97   :  { %94 = vst.msk [vmem:[#allocation0] sm:$0x1] %vm93_vm15, %v92_v24  }
  0x9e   :  { %v97_v31 = vld [vmem:[#allocation0] sm:$0x1] }
  0x9f   :  { %100 = vst [vmem:[%s208_s1] sm:$0x1] %v97_v31 }

// kernel: squeeze.4
= control target key start
LH: loop header
LB: loop body
LE: loop exit
PB: predicated region body
PF: predicated region fallthrough
CT: control target
= control target key end

     0   :  { %s130_s8 = smov 120   ;;  %s131_s9 = smov 88   ;;  %vm7_vm0 = vcmask 64512   ;;  %s221_s0 = inlined_call_operand.vmem [shape: f32[128], index: 0, kind: input, shape index: {}]   ;;  %s222_s1 = inlined_call_operand.vmem [shape: f32[16,8], index: 1, kind: output, shape index: {}]  }
   0x1   :  { %v4_v0 = vld [vmem:[%s221_s0] sm:$0x1]  ;;  %s129_s0 = smov 104   ;;  %s132_s10 = smov 96  }
   0x2   :  { %5 = vst [vmem:[#allocation0] sm:$0x1] %v4_v0  ;;  %s133_s11 = smov 112   ;;  %s134_s12 = smov 80  }
   0x3   :  { %s135_s13 = smov 64   ;;  %s136_s14 = smov 72  }
   0x4   :  { %s137_s15 = smov 56   ;;  %s138_s16 = smov 40  }
   0x5   :  { %s139_s17 = smov 48   ;;  %s140_s18 = smov 32  }
   0x6   :  { %s141_s19 = smov 16   ;;  %s142_s20 = smov 24  }
   0x7   :  { %s143_s21 = smov 8  }
   0x9   :  { %v21_v1 = vld [vmem:[#allocation0] sm:$0x1]  }
   0xa   :  { %v9_v2 = vld [vmem:[#allocation0] sm:$0x1]   ;;  %22 = vrot.lane.b32.xlu1 %v21_v1, %s129_s0 }
   0xb   :  { %10 = vrot.lane.b32.xlu0 %v9_v2, %s130_s8  ;;  %v33_v3 = vld [vmem:[#allocation0] sm:$0x1]  }
   0xc   :  { %34 = vrot.lane.b32.xlu2 %v33_v3, %s131_s9  ;;  %v27_v4 = vld [vmem:[#allocation0] sm:$0x1]  }
   0xd   :  { %v15_v5 = vld [vmem:[#allocation0] sm:$0x1]  }
   0xe   :  { %v39_v6 = vld [vmem:[#allocation0] sm:$0x1]  }
   0xf   :  { %v51_v7 = vld [vmem:[#allocation0] sm:$0x1]  }
  0x10   :  { %v45_v8 = vld [vmem:[#allocation0] sm:$0x1]  }
  0x11   :  { %v57_v9 = vld [vmem:[#allocation0] sm:$0x1]  }
  0x12   :  { %28 = vrot.lane.b32.xlu1 %v27_v4, %s132_s10  ;;  %v69_v10 = vld [vmem:[#allocation0] sm:$0x1]  }
  0x13   :  { %16 = vrot.lane.b32.xlu0 %v15_v5, %s133_s11  ;;  %v63_v11 = vld [vmem:[#allocation0] sm:$0x1]  }
  0x14   :  { %40 = vrot.lane.b32.xlu2 %v39_v6, %s134_s12  ;;  %v75_v12 = vld [vmem:[#allocation0] sm:$0x1]  }
  0x15   :  { %v87_v13 = vld [vmem:[#allocation0] sm:$0x1]  }
  0x16   :  { %v81_v14 = vld [vmem:[#allocation0] sm:$0x1]  }
  0x17   :  { %v93_v15 = vld [vmem:[#allocation0] sm:$0x1]  }
  0x18   :  { %v6_v21 = vld [vmem:[#allocation0] sm:$0x1]  }
  0x19   :  { %8 = vst.msk [vmem:[%s222_s1] sm:$0x1] %vm7_vm0, %v6_v21  }
  0x1a   :  { %52 = vrot.lane.b32.xlu1 %v51_v7, %s135_s13 }
  0x1b   :  { %46 = vrot.lane.b32.xlu0 %v45_v8, %s136_s14 }
  0x1c   :  { %58 = vrot.lane.b32.xlu2 %v57_v9, %s137_s15 }
  0x22   :  { %70 = vrot.lane.b32.xlu1 %v69_v10, %s138_s16 }
  0x23   :  { %64 = vrot.lane.b32.xlu0 %v63_v11, %s139_s17 }
  0x24   :  { %76 = vrot.lane.b32.xlu2 %v75_v12, %s140_s18 }
  0x2a   :  { %88 = vrot.lane.b32.xlu1 %v87_v13, %s141_s19 }
  0x2b   :  { %82 = vrot.lane.b32.xlu0 %v81_v14, %s142_s20 }
  0x2c   :  { %94 = vrot.lane.b32.xlu2 %v93_v15, %s143_s21 }
  0x66   :  { %v35_v16 = vpop.permute.xlu2 %34  }
  0x67   :  { %103 = vst.msk [vmem:[%s222_s1 + $0x5] sm:$0x1] %vm7_vm0, %v35_v16  }
  0x6e   :  { %v41_v17 = vpop.permute.xlu2 %40  }
  0x6f   :  { %104 = vst.msk [vmem:[%s222_s1 + $0x6] sm:$0x1] %vm7_vm0, %v41_v17  }
  0x76   :  { %v59_v18 = vpop.permute.xlu2 %58  }
  0x77   :  { %107 = vst.msk [vmem:[%s222_s1 + $0x9] sm:$0x1] %vm7_vm0, %v59_v18  }
  0x7c   :  { %v23_v19 = vpop.permute.xlu1 %22  }
  0x7d   :  { %v11_v20 = vpop.permute.xlu0 %10   ;;  %101 = vst.msk [vmem:[%s222_s1 + $0x3] sm:$0x1] %vm7_vm0, %v23_v19  }
  0x7e   :  { %99 = vst.msk [vmem:[%s222_s1 + $0x1] sm:$0x1] %vm7_vm0, %v11_v20   ;;  %v77_v22 = vpop.permute.xlu2 %76  }
  0x7f   :  { %110 = vst.msk [vmem:[%s222_s1 + $0xc] sm:$0x1] %vm7_vm0, %v77_v22  }
  0x84   :  { %v29_v23 = vpop.permute.xlu1 %28  }
  0x85   :  { %v17_v24 = vpop.permute.xlu0 %16   ;;  %102 = vst.msk [vmem:[%s222_s1 + $0x4] sm:$0x1] %vm7_vm0, %v29_v23  }
  0x86   :  { %100 = vst.msk [vmem:[%s222_s1 + $0x2] sm:$0x1] %vm7_vm0, %v17_v24   ;;  %v95_v25 = vpop.permute.xlu2 %94  }
  0x87   :  { %113 = vst.msk [vmem:[%s222_s1 + $0xf] sm:$0x1] %vm7_vm0, %v95_v25  }
  0x8c   :  { %v53_v26 = vpop.permute.xlu1 %52  }
  0x8d   :  { %v47_v27 = vpop.permute.xlu0 %46   ;;  %106 = vst.msk [vmem:[%s222_s1 + $0x8] sm:$0x1] %vm7_vm0, %v53_v26  }
  0x8e   :  { %105 = vst.msk [vmem:[%s222_s1 + $0x7] sm:$0x1] %vm7_vm0, %v47_v27  }
  0x94   :  { %v71_v28 = vpop.permute.xlu1 %70  }
  0x95   :  { %v65_v29 = vpop.permute.xlu0 %64   ;;  %109 = vst.msk [vmem:[%s222_s1 + $0xb] sm:$0x1] %vm7_vm0, %v71_v28  }
  0x96   :  { %108 = vst.msk [vmem:[%s222_s1 + $0xa] sm:$0x1] %vm7_vm0, %v65_v29  }
  0x9c   :  { %v89_v30 = vpop.permute.xlu1 %88  }
  0x9d   :  { %v83_v31 = vpop.permute.xlu0 %82   ;;  %112 = vst.msk [vmem:[%s222_s1 + $0xe] sm:$0x1] %vm7_vm0, %v89_v30  }
  0x9e   :  { %111 = vst.msk [vmem:[%s222_s1 + $0xd] sm:$0x1] %vm7_vm0, %v83_v31  }

// kernel: up_forward.2
= control target key start
LH: loop header
LB: loop body
LE: loop exit
PB: predicated region body
PF: predicated region fallthrough
CT: control target
= control target key end

     0   :  { %vm37_vm0 = vcmask 130048   ;;  %v150_v19 = vlaneseq  ;;  %vm115_vm1 = vcmask 261120   ;;  %vm124_vm2 = vcmask 1040384   ;;  %s547_s25 = smov 64   ;;  %s715_s3 = inlined_call_operand.vmem [shape: bf16[16,32], index: 3, kind: input, shape index: {}]   ;;  %s716_s0 = inlined_call_operand.vmem [shape: f32[2,8,16], index: 0, kind: input, shape index: {}]   ;;  %s717_s2 = inlined_call_operand.vmem [shape: bf16[32,16], index: 2, kind: input, shape index: {}]   ;;  %s718_s4 = inlined_call_operand.vmem [shape: bf16[192,128], index: 4, kind: input, shape index: {}]   ;;  %s719_s1 = inlined_call_operand.vmem [shape: f32[2,16,32], index: 1, kind: input, shape index: {}]   ;;  %s720_s5 = inlined_call_operand.vmem [shape: f32[1,128], index: 5, kind: input, shape index: {}]   ;;  %s721_s6 = inlined_call_operand.vmem [shape: bf16[2,16,128], index: 6, kind: output, shape index: {0}]   ;;  %s722_s7 = inlined_call_operand.vmem [shape: f32[1,2,128], index: 7, kind: output, shape index: {1}]  }
   0x1   :  { %v489_v0 = vld [vmem:[%s715_s3] sm:$0xff]  ;;  %v27_v2 = vld [vmem:[%s716_s0 + $0x8] sm:$0xff]  ;;  %v503_v15 = vld [vmem:[%s718_s4 + $0x58] sm:$0xff]  ;;  %vm137_vm5 = vcmask 1046528   ;;  %vm231_vm7 = vcmask 523264  }
   0x2   :  { %v26_v1 = vld [vmem:[%s716_s0] sm:$0xff]  ;;  %48 = vmatpush.bf16.msra.mxu0 %v489_v0  ;;  %v491_v8 = vld [vmem:[%s717_s2 + $0x8] sm:$0xff]  ;;  %s546_s0 = smov 32   ;;  %369 = vmatpush.bf16.msra.mxu3 %v503_v15  ;;  %v502_v16 = vld [vmem:[%s718_s4 + $0x50] sm:$0xff]  ;;  %v151_v23 = vshrl.u32 %v150_v19, 7 }
   0x3   :  { %v28_v3 = vpack.c.bf16 %v27_v2, %v26_v1  ;;  %v490_v7 = vld [vmem:[%s717_s2] sm:$0xff]  ;;  %v501_v17 = vld [vmem:[%s718_s4 + $0x48] sm:$0xff]  ;;  %v97_v21 = vld [vmem:[%s719_s1 + $0x10] sm:$0xff] }
   0x4   :  { %v500_v18 = vld [vmem:[%s718_s4 + $0x40] sm:$0xff]  ;;  %v98_v22 = vld [vmem:[%s719_s1 + $0x18] sm:$0xff]  ;;  %v152_v26 = vadd.s32 8, %v151_v23  ;;  %v153_v30 = vadd.s32 16, %v151_v23  ;;  %v498_v34 = vld [vmem:[%s718_s4 + $0x30] sm:$0xff]  ;;  %v159_v44 = vand.u32 15, %v151_v23 }
   0x5   :  { %428 = vmatmul.msk.bf16.vlgmr.msra.gmra.mxu0 %vm37_vm0, %v28_v3  ;;  %v499_v27 = vld [vmem:[%s718_s4 + $0x38] sm:$0xff]  ;;  %v95_v38 = vld [vmem:[%s719_s1] sm:$0xff]  ;;  %v96_v39 = vld [vmem:[%s719_s1 + $0x8] sm:$0xff]  ;;  %v154_v3 = vadd.s32 24, %v151_v23 }
   0x6   :  { %370 = vmatpush.bf16.msra.mxu3 %v502_v16  ;;  %515 = vmatpush.bf16.msra.mxu2 %v499_v27  ;;  %v166_v35 = vand.u32 15, %v152_v26  ;;  %v173_v37 = vand.u32 15, %v153_v30  ;;  %v497_v41 = vld [vmem:[%s718_s4 + $0x28] sm:$0xff]  ;;  %v496_v54 = vld [vmem:[%s718_s4 + $0x20] sm:$0xff]  ;;  %vm664_vm6 = vcmp.eq.s32.totalorder %v159_v44, 0  ;;  %v495_v1 = vld [vmem:[%s718_s4 + $0x18] sm:$0xff] }
   0x7   :  { %346 = vmatpush.bf16.msrb.mxu0 %v499_v27 }
   0x8   :  { %vm650_vm3 = vcmp.eq.s32.totalorder %v166_v35, 15  ;;  %vm657_vm4 = vcmp.eq.s32.totalorder %v173_v37, 0 }
   0xa   :  { %371 = vmatpush.bf16.msra.mxu3 %v501_v17  ;;  %516 = vmatpush.bf16.msra.mxu2 %v498_v34 }
   0xb   :  { %347 = vmatpush.bf16.msrb.mxu0 %v498_v34 }
   0xe   :  { %372 = vmatpush.bf16.msra.mxu3 %v500_v18  ;;  %517 = vmatpush.bf16.msra.mxu2 %v497_v41 }
   0xf   :  { %348 = vmatpush.bf16.msrb.mxu0 %v497_v41 }
  0x12   :  { %518 = vmatpush.bf16.msra.mxu2 %v496_v54 }
  0x13   :  { %349 = vmatpush.bf16.msrb.mxu0 %v496_v54 }
  0x16   :  { %519 = vmatpush.bf16.msra.mxu2 %v495_v1 }
  0x17   :  { %350 = vmatpush.bf16.msrb.mxu0 %v495_v1 }
  0x82   :  { %v50_v4 = vpop.f32.mrf.mxu0 }
  0x8a   :  { %v52_v5 = vpop.f32.mrf.mxu0 }
  0x8b   :  { %v59_v6 = vpack.c.bf16 %v52_v5, %v50_v4  ;;  %v494_v4 = vld [vmem:[%s718_s4 + $0x10] sm:$0xff] }
  0x8c   :  { %520 = vmatpush.bf16.msra.mxu2 %v494_v4  ;;  %351 = vmatpush.bf16.msrb.mxu0 %v494_v4 }
  0x8d   :  { %83 = vmatpush.bf16.msra.mxu1 %v59_v6  ;;  %v180_v6 = vand.u32 15, %v154_v3 }
  0x8f   :  { %vm214_vm8 = vcmp.eq.s32.totalorder %v180_v6, 15 }
  0x90   :  { %437 = vmatmul.msk.bf16.vlgmr.msra.gmra.mxu1 %vm37_vm0, %v490_v7  ;;  %v493_v7 = vld [vmem:[%s718_s4 + $0x8] sm:$0xff] }
  0x91   :  { %521 = vmatpush.bf16.msra.mxu2 %v493_v7  ;;  %352 = vmatpush.bf16.msrb.mxu0 %v493_v7 }
  0xa0   :  { %438 = vmatmul.msk.bf16.gmra.mxu1 %vm37_vm0, %v491_v8 }
 0x10d   :  { %v85_v9 = vpop.f32.mrf.mxu1 }
 0x115   :  { %v87_v10 = vpop.f32.mrf.mxu1 }
 0x116   :  { %v530_v14 = vpack.i.bf16 %v87_v10, %v85_v9 }
 0x11d   :  { %v90_v11 = vpop.f32.mrf.mxu1 }
 0x125   :  { %v92_v12 = vpop.f32.mrf.mxu1 }
 0x126   :  { %v525_v13 = vpack.i.bf16 %v92_v12, %v90_v11  ;;  %v492_v12 = vld [vmem:[%s718_s4] sm:$0xff] }
 0x127   :  { %522 = vmatpush.bf16.msra.mxu2 %v492_v12  ;;  %353 = vmatpush.bf16.msrb.mxu0 %v492_v12 }
 0x128   :  { %526 = vrot.lane.b32.xlu0 %v525_v13, %s546_s0 }
 0x130   :  { %531 = vrot.lane.b32.xlu0 %v530_v14, %s546_s0 }
 0x19a   :  { %v527_v20 = vpop.permute.xlu0 %526 }
 0x19b   :  { %v529_v24 = vunpack.i.h.bf16 %v527_v20  ;;  %v528_v25 = vunpack.i.l.bf16 %v527_v20 }
 0x19d   :  { %v625_v28 = vsel %vm115_vm1, %v97_v21, %v528_v25  ;;  %v628_v29 = vsel %vm115_vm1, %v98_v22, %v529_v24 }
 0x19e   :  { %v130_v31 = vrot.slane %v628_v29, 7  ;;  %v535_v32 = vpack.i.bf16 %v628_v29, %v625_v28  ;;  %v128_v33 = vrot.slane %v625_v28, 7  ;;  %v141_v46 = vrot.slane %v625_v28, 1 }
 0x19f   :  { %v143_v5 = vrot.slane %v628_v29, 1  ;;  %v545_v29 = vld [vmem:[%s720_s5] ss:$0 sm:$0xff] }
 0x1a0   :  { %536 = vrot.lane.b32.xlu1 %v535_v32, %s547_s25  ;;  %v639_v36 = vsel %vm124_vm2, %v128_v33, %v130_v31 }
 0x1a1   :  { %v149_v8 = vsel %vm137_vm5, %v143_v5, 0.0  ;;  %v144_v9 = vsel %vm137_vm5, %v141_v46, %v143_v5 }
 0x1a2   :  { %v532_v40 = vpop.permute.xlu0 %531  ;;  %v218_v10 = vsel %vm214_vm8, 0.0, %v149_v8 }
 0x1a3   :  { %v534_v42 = vunpack.i.h.bf16 %v532_v40  ;;  %v533_v43 = vunpack.i.l.bf16 %v532_v40  ;;  %v239_v11 = vpack.c.bf16 %v218_v10, %v144_v9 }
 0x1a5   :  { %v117_v47 = vsel %vm115_vm1, %v96_v39, %v534_v42  ;;  %v116_v48 = vsel %vm115_vm1, %v95_v38, %v533_v43 }
 0x1a6   :  { %v126_v50 = vrot.slane %v117_v47, 7  ;;  %v139_v51 = vrot.slane %v117_v47, 1  ;;  %v125_v52 = vrot.slane %v116_v48, 7  ;;  %v138_v53 = vrot.slane %v116_v48, 1 }
 0x1a7   :  { %v540_v55 = vpack.i.bf16 %v117_v47, %v116_v48 }
 0x1a8   :  { %v140_v57 = vsel %vm137_vm5, %v138_v53, %v139_v51  ;;  %v142_v58 = vsel %vm137_vm5, %v139_v51, %v141_v46  ;;  %v129_v59 = vsel %vm124_vm2, %v126_v50, %v128_v33  ;;  %v127_v60 = vsel %vm124_vm2, %v125_v52, %v126_v50 }
 0x1a9   :  { %541 = vrot.lane.b32.xlu1 %v540_v55, %s547_s25  ;;  %v216_v61 = vsel %vm650_vm3, 0.0, %v142_v58  ;;  %v209_v62 = vsel %vm657_vm4, 0.0, %v129_v59  ;;  %v136_v63 = vsel %vm124_vm2, 0.0, %v125_v52 }
 0x1aa   :  { %v237_v0 = vpack.c.bf16 %v216_v61, %v140_v57  ;;  %v207_v2 = vsel %vm664_vm6, 0.0, %v136_v63 }
 0x1ac   :  { %487 = vmatmul.msk.bf16.vlgmr.msra.gmra.mxu3 %vm231_vm7, %v237_v0 }
 0x1bc   :  { %488 = vmatmul.msk.bf16.gmra.mxu3 %vm231_vm7, %v239_v11 }
 0x212   :  { %v537_v13 = vpop.permute.xlu1 %536 }
 0x213   :  { %v539_v14 = vunpack.i.h.bf16 %v537_v13  ;;  %v538_v15 = vunpack.i.l.bf16 %v537_v13 }
 0x215   :  { %v234_v16 = vsel %vm231_vm7, %v209_v62, %v538_v15  ;;  %v235_v17 = vsel %vm231_vm7, %v639_v36, %v539_v14 }
 0x216   :  { %v238_v18 = vpack.c.bf16 %v235_v17, %v234_v16 }
 0x218   :  { %359 = vmatmul.bf16.vlgmr.msra.gmra.mxu2 %v238_v18 }
 0x21b   :  { %v542_v19 = vpop.permute.xlu1 %541 }
 0x21c   :  { %v544_v20 = vunpack.i.h.bf16 %v542_v19  ;;  %v543_v21 = vunpack.i.l.bf16 %v542_v19 }
 0x21e   :  { %v232_v22 = vsel %vm231_vm7, %v207_v2, %v543_v21  ;;  %v233_v23 = vsel %vm231_vm7, %v127_v60, %v544_v20 }
 0x21f   :  { %v236_v24 = vpack.c.bf16 %v233_v23, %v232_v22 }
 0x221   :  { %354 = vmatmul.bf16.vlgmr.msrb.gmra.mxu0 %v236_v24 }
 0x22f   :  { %v374_v25 = vpop.f32.mrf.mxu3 }
 0x237   :  { %v376_v26 = vpop.f32.mrf.mxu3 }
 0x23f   :  { %v379_v27 = vpop.f32.mrf.mxu3 }
 0x247   :  { %v381_v35 = vpop.f32.mrf.mxu3 }
 0x29b   :  { %v360_v28 = vpop.f32.mrf.mxu2 }
 0x29c   :  { %v361_v31 = vadd.f32 %v545_v29, %v360_v28 }
 0x29e   :  { %v355_v30 = vpop.f32.mrf.mxu0  ;;  %v380_v36 = vadd.f32 %v379_v27, %v361_v31 }
 0x29f   :  { %v356_v32 = vadd.f32 %v545_v29, %v355_v30 }
 0x2a0   :  { %v403_v47 = vmul.f32 %v380_v36, %v380_v36 }
 0x2a1   :  { %v375_v39 = vadd.f32 %v374_v25, %v356_v32 }
 0x2a3   :  { %v362_v33 = vpop.f32.mrf.mxu2  ;;  %v401_v43 = vmul.f32 %v375_v39, %v375_v39 }
 0x2a4   :  { %v363_v34 = vadd.f32 %v545_v29, %v362_v33 }
 0x2a6   :  { %v382_v37 = vadd.f32 %v381_v35, %v363_v34  ;;  %v357_v38 = vpop.f32.mrf.mxu0 }
 0x2a7   :  { %v358_v40 = vadd.f32 %v545_v29, %v357_v38 }
 0x2a8   :  { %v512_v41 = vpack.c.bf16 %v382_v37, %v380_v36  ;;  %v404_v50 = vmul.f32 %v382_v37, %v382_v37 }
 0x2a9   :  { %v377_v42 = vadd.f32 %v376_v26, %v358_v40 }
 0x2aa   :  { %514 = vst [vmem:[%s721_s6 + $0x8] sm:$0xff] %v512_v41  }
 0x2ab   :  { %v507_v44 = vpack.c.bf16 %v377_v42, %v375_v39  ;;  %v392_v45 = vadd.f32 %v377_v42, %v375_v39  ;;  %v402_v46 = vmul.f32 %v377_v42, %v377_v42 }
 0x2ad   :  { %508 = vst [vmem:[%s721_s6] sm:$0xff] %v507_v44   ;;  %v393_v48 = vadd.f32 %v392_v45, %v380_v36  ;;  %v405_v49 = vadd.f32 %v402_v46, %v401_v43 }
 0x2af   :  { %v394_v51 = vadd.f32 %v393_v48, %v382_v37  ;;  %v406_v52 = vadd.f32 %v405_v49, %v403_v47 }
 0x2b1   :  { %v395_v53 = vrot.slane %v394_v51, 4  ;;  %v407_v54 = vadd.f32 %v406_v52, %v404_v50 }
 0x2b3   :  { %v396_v55 = vadd.f32 %v395_v53, %v394_v51  ;;  %v408_v56 = vrot.slane %v407_v54, 4 }
 0x2b5   :  { %v397_v57 = vrot.slane %v396_v55, 2  ;;  %v409_v58 = vadd.f32 %v408_v56, %v407_v54 }
 0x2b7   :  { %v398_v59 = vadd.f32 %v397_v57, %v396_v55  ;;  %v410_v60 = vrot.slane %v409_v58, 2 }
 0x2b9   :  { %v399_v61 = vrot.slane %v398_v59, 1  ;;  %v411_v62 = vadd.f32 %v410_v60, %v409_v58 }
 0x2bb   :  { %v412_v63 = vrot.slane %v411_v62, 1  ;;  %v400_v0 = vadd.f32 %v399_v61, %v398_v59 }
 0x2bd   :  { %v413_v1 = vadd.f32 %v412_v63, %v411_v62 }
 0x2bf   :  { %v414_v2 = vsel %vm124_vm2, %v400_v0, %v413_v1 }
 0x2c0   :  { %415 = vst [vmem:[%s722_s7] sm:$0x3] %v414_v2 }

// kernel: up_forward.3
= control target key start
LH: loop header
LB: loop body
LE: loop exit
PB: predicated region body
PF: predicated region fallthrough
CT: control target
= control target key end

     0   :  { %v80_v22 = vlaneseq  ;;  %vm54_vm0 = vcmask 1040384   ;;  %vm67_vm1 = vcmask 1046528   ;;  %vm605_vm5 = vmmov 1   ;;  %s767_s3 = inlined_call_operand.vmem [shape: bf16[384,128], index: 3, kind: input, shape index: {}]   ;;  %s768_s0 = inlined_call_operand.vmem [shape: bf16[2,16,128], index: 0, kind: input, shape index: {}]   ;;  %s769_s1 = inlined_call_operand.vmem [shape: f32[1,128], index: 1, kind: input, shape index: {}]   ;;  %s770_s2 = inlined_call_operand.vmem [shape: f32[1,128], index: 2, kind: input, shape index: {}]   ;;  %s771_s4 = inlined_call_operand.vmem [shape: f32[1,128], index: 4, kind: input, shape index: {}]   ;;  %s772_s5 = inlined_call_operand.vmem [shape: f32[2,16,128], index: 5, kind: output, shape index: {0}]   ;;  %s773_s6 = inlined_call_operand.vmem [shape: f32[1,2,128], index: 6, kind: output, shape index: {1}]  }
   0x1   :  { %v563_v0 = vld [vmem:[%s767_s3 + $0x38] sm:$0xff]  ;;  %v562_v3 = vld [vmem:[%s767_s3 + $0x30] sm:$0xff]  ;;  %v561_v6 = vld [vmem:[%s767_s3 + $0x28] sm:$0xff] }
   0x2   :  { %v571_v1 = vld [vmem:[%s767_s3 + $0x78] sm:$0xff]  ;;  %351 = vmatpush.bf16.msra.mxu0 %v563_v0  ;;  %v570_v4 = vld [vmem:[%s767_s3 + $0x70] sm:$0xff]  ;;  %593 = vmatpush.bf16.msra.mxu3 %v563_v0  ;;  %v569_v7 = vld [vmem:[%s767_s3 + $0x68] sm:$0xff]  ;;  %v698_v30 = vshrl.u32 %v80_v22, 7 }
   0x3   :  { %v579_v2 = vld [vmem:[%s767_s3 + $0xb8] sm:$0xff]  ;;  %370 = vmatpush.bf16.msra.mxu1 %v571_v1  ;;  %v578_v5 = vld [vmem:[%s767_s3 + $0xb0] sm:$0xff]  ;;  %v577_v8 = vld [vmem:[%s767_s3 + $0xa8] sm:$0xff] }
   0x4   :  { %389 = vmatpush.bf16.msra.mxu2 %v579_v2  ;;  %v581_v9 = vld [vmem:[%s768_s0] sm:$0xff]   ;;  %v588_v10 = vld [vmem:[%s768_s0 + $0x8] sm:$0xff]   ;;  %v559_v25 = vld [vmem:[%s767_s3 + $0x18] sm:$0xff]  ;;  %v82_v39 = vadd.s32 8, %v698_v30  ;;  %v83_v41 = vadd.s32 16, %v698_v30  ;;  %v89_v42 = vand.u32 15, %v698_v30 }
   0x5   :  { %v560_v11 = vld [vmem:[%s767_s3 + $0x20] sm:$0xff]  ;;  %v582_v12 = vunpack.c.l.bf16 %v581_v9  ;;  %v583_v13 = vunpack.c.h.bf16 %v581_v9  ;;  %v586_v15 = vunpack.c.l.bf16 %v588_v10  ;;  %v587_v16 = vunpack.c.h.bf16 %v588_v10  ;;  %v567_v26 = vld [vmem:[%s767_s3 + $0x58] sm:$0xff]  ;;  %v558_v33 = vld [vmem:[%s767_s3 + $0x10] sm:$0xff] }
   0x6   :  { %352 = vmatpush.bf16.msra.mxu0 %v562_v3  ;;  %594 = vmatpush.bf16.msra.mxu3 %v562_v3  ;;  %v602_v14 = vld [vmem:[%s769_s1] ss:$0 sm:$0xff]  ;;  %v575_v29 = vld [vmem:[%s767_s3 + $0x98] sm:$0xff]  ;;  %v566_v34 = vld [vmem:[%s767_s3 + $0x50] sm:$0xff]  ;;  %v96_v51 = vand.u32 15, %v82_v39  ;;  %v103_v54 = vand.u32 15, %v83_v41 }
   0x7   :  { %371 = vmatpush.bf16.msra.mxu1 %v570_v4  ;;  %v568_v17 = vld [vmem:[%s767_s3 + $0x60] sm:$0xff]  ;;  %v34_v20 = vmul.f32 %v602_v14, %v582_v12  ;;  %v35_v21 = vmul.f32 %v602_v14, %v583_v13  ;;  %v36_v23 = vmul.f32 %v602_v14, %v586_v15  ;;  %v37_v24 = vmul.f32 %v602_v14, %v587_v16  ;;  %v574_v37 = vld [vmem:[%s767_s3 + $0x90] sm:$0xff]  ;;  %v557_v43 = vld [vmem:[%s767_s3 + $0x8] sm:$0xff] }
   0x8   :  { %390 = vmatpush.bf16.msra.mxu2 %v578_v5  ;;  %v603_v18 = vld [vmem:[%s770_s2] ss:$0 sm:$0xff]  ;;  %v565_v44 = vld [vmem:[%s767_s3 + $0x48] sm:$0xff]  ;;  %vm589_vm2 = vcmp.ne.s32.totalorder %v89_v42, 0  ;;  %vm591_vm3 = vcmp.ne.s32.totalorder %v96_v51, 15  ;;  %vm590_vm4 = vcmp.ne.s32.totalorder %v103_v54, 0 }
   0x9   :  { %v576_v19 = vld [vmem:[%s767_s3 + $0xa0] sm:$0xff]  ;;  %v42_v27 = vadd.f32 %v603_v18, %v34_v20  ;;  %v43_v28 = vadd.f32 %v603_v18, %v35_v21  ;;  %v44_v31 = vadd.f32 %v603_v18, %v36_v23  ;;  %v45_v32 = vadd.f32 %v603_v18, %v37_v24  ;;  %v573_v49 = vld [vmem:[%s767_s3 + $0x88] sm:$0xff]  ;;  %vm541_vm6 = vmpackc.low %vm605_vm5, %vm589_vm2 }
   0xa   :  { %353 = vmatpush.bf16.msra.mxu0 %v561_v6  ;;  %595 = vmatpush.bf16.msra.mxu3 %v561_v6  ;;  %v556_v55 = vld [vmem:[%s767_s3] sm:$0xff]  ;;  %vm549_vm7 = vmpackc.low %vm591_vm3, %vm605_vm5  ;;  %v84_v4 = vadd.s32 24, %v698_v30 }
   0xb   :  { %372 = vmatpush.bf16.msra.mxu1 %v569_v7  ;;  %v46_v35 = vmax.f32 %v42_v27, 0.0  ;;  %v47_v36 = vmax.f32 %v43_v28, 0.0  ;;  %v709_v38 = vmax.f32 %v44_v31, 0.0  ;;  %v49_v40 = vmax.f32 %v45_v32, 0.0  ;;  %v564_v56 = vld [vmem:[%s767_s3 + $0x40] sm:$0xff]  ;;  %vm545_vm8 = vmpackc.low %vm605_vm5, %vm590_vm4 }
   0xc   :  { %391 = vmatpush.bf16.msra.mxu2 %v577_v8  ;;  %v572_v60 = vld [vmem:[%s767_s3 + $0x80] sm:$0xff]  ;;  %v110_v6 = vand.u32 15, %v84_v4 }
   0xd   :  { %v55_v45 = vrot.slane %v46_v35, 7  ;;  %v56_v46 = vrot.slane %v47_v36, 7  ;;  %v68_v47 = vrot.slane %v46_v35, 1  ;;  %v69_v48 = vrot.slane %v47_v36, 1 }
   0xe   :  { %354 = vmatpush.bf16.msra.mxu0 %v560_v11  ;;  %596 = vmatpush.bf16.msra.mxu3 %v560_v11  ;;  %v71_v50 = vrot.slane %v709_v38, 1  ;;  %v58_v52 = vrot.slane %v709_v38, 7  ;;  %v60_v53 = vrot.slane %v49_v40, 7  ;;  %v150_v1 = vpack.c.bf16 %v47_v36, %v46_v35  ;;  %v604_v11 = vld [vmem:[%s771_s4] ss:$0 sm:$0xff] }
   0xf   :  { %373 = vmatpush.bf16.msra.mxu1 %v568_v17  ;;  %v57_v57 = vsel %vm54_vm0, %v55_v45, %v56_v46  ;;  %v66_v58 = vsel %vm54_vm0, 0.0, %v55_v45  ;;  %v70_v59 = vsel %vm67_vm1, %v68_v47, %v69_v48  ;;  %v73_v5 = vrot.slane %v49_v40, 1 }
  0x10   :  { %392 = vmatpush.bf16.msra.mxu2 %v576_v19  ;;  %v72_v61 = vsel %vm67_vm1, %v69_v48, %v71_v50  ;;  %v59_v62 = vsel %vm54_vm0, %v56_v46, %v58_v52  ;;  %v61_v63 = vsel %vm54_vm0, %v58_v52, %v60_v53  ;;  %v542_v0 = vpack.c.bf16 %v57_v57, %v66_v58 }
  0x11   :  { %v550_v2 = vpack.c.bf16 %v72_v61, %v70_v59  ;;  %v546_v3 = vpack.c.bf16 %v61_v63, %v59_v62  ;;  %v74_v7 = vsel %vm67_vm1, %v71_v50, %v73_v5  ;;  %v79_v8 = vsel %vm67_vm1, %v73_v5, 0.0 }
  0x12   :  { %355 = vmatpush.bf16.msra.mxu0 %v559_v25  ;;  %597 = vmatpush.bf16.msra.mxu3 %v559_v25  ;;  %vm592_vm9 = vcmp.ne.s32.totalorder %v110_v6, 15  ;;  %v153_v9 = vpack.c.bf16 %v49_v40, %v709_v38  ;;  %v554_v10 = vpack.c.bf16 %v79_v8, %v74_v7 }
  0x13   :  { %374 = vmatpush.bf16.msra.mxu1 %v567_v26  ;;  %vm553_vm10 = vmpackc.low %vm592_vm9, %vm605_vm5 }
  0x14   :  { %393 = vmatpush.bf16.msra.mxu2 %v575_v29 }
  0x16   :  { %356 = vmatpush.bf16.msra.mxu0 %v558_v33  ;;  %598 = vmatpush.bf16.msra.mxu3 %v558_v33 }
  0x17   :  { %375 = vmatpush.bf16.msra.mxu1 %v566_v34 }
  0x18   :  { %394 = vmatpush.bf16.msra.mxu2 %v574_v37 }
  0x1a   :  { %357 = vmatpush.bf16.msra.mxu0 %v557_v43  ;;  %599 = vmatpush.bf16.msra.mxu3 %v557_v43 }
  0x1b   :  { %376 = vmatpush.bf16.msra.mxu1 %v565_v44 }
  0x1c   :  { %395 = vmatpush.bf16.msra.mxu2 %v573_v49 }
  0x1e   :  { %358 = vmatpush.bf16.msra.mxu0 %v556_v55  ;;  %600 = vmatpush.bf16.msra.mxu3 %v556_v55 }
  0x1f   :  { %377 = vmatpush.bf16.msra.mxu1 %v564_v56 }
  0x20   :  { %396 = vmatpush.bf16.msra.mxu2 %v572_v60 }
  0x21   :  { %543 = vmatmul.msk.bf16.vlgmr.msra.gmra.mxu0 %vm541_vm6, %v542_v0  ;;  %547 = vmatmul.msk.bf16.vlgmr.msra.gmra.mxu3 %vm545_vm8, %v546_v3 }
  0x22   :  { %378 = vmatmul.bf16.vlgmr.msra.gmra.mxu1 %v150_v1 }
  0x23   :  { %551 = vmatmul.msk.bf16.vlgmr.msra.gmra.mxu2 %vm549_vm7, %v550_v2 }
  0x32   :  { %383 = vmatmul.bf16.gmra.mxu1 %v153_v9 }
  0x33   :  { %555 = vmatmul.msk.bf16.gmra.mxu2 %vm553_vm10, %v554_v10 }
  0x9e   :  { %v360_v12 = vpop.f32.mrf.mxu0 }
  0x9f   :  { %v379_v13 = vpop.f32.mrf.mxu1  ;;  %v361_v14 = vadd.f32 %v604_v11, %v360_v12 }
  0xa1   :  { %v380_v15 = vadd.f32 %v379_v13, %v361_v14 }
  0xa4   :  { %v365_v22 = vpop.f32.mrf.mxu3 }
  0xa5   :  { %v366_v24 = vadd.f32 %v604_v11, %v365_v22 }
  0xa6   :  { %v398_v16 = vpop.f32.mrf.mxu2  ;;  %v362_v18 = vpop.f32.mrf.mxu0 }
  0xa7   :  { %v399_v17 = vadd.f32 %v398_v16, %v380_v15  ;;  %v381_v19 = vpop.f32.mrf.mxu1  ;;  %v363_v20 = vadd.f32 %v604_v11, %v362_v18 }
  0xa9   :  { %408 = vst [vmem:[%s772_s5] sm:$0xff] %v399_v17  ;;  %v382_v21 = vadd.f32 %v381_v19, %v363_v20  ;;  %v421_v34 = vmul.f32 %v399_v17, %v399_v17 }
  0xac   :  { %v367_v30 = vpop.f32.mrf.mxu3 }
  0xad   :  { %v368_v33 = vadd.f32 %v604_v11, %v367_v30 }
  0xae   :  { %v400_v23 = vpop.f32.mrf.mxu2 }
  0xaf   :  { %v401_v25 = vadd.f32 %v400_v23, %v382_v21  ;;  %v384_v26 = vpop.f32.mrf.mxu1 }
  0xb0   :  { %v385_v27 = vadd.f32 %v384_v26, %v366_v24 }
  0xb1   :  { %409 = vst [vmem:[%s772_s5 + $0x8] sm:$0xff] %v401_v25  ;;  %v422_v32 = vmul.f32 %v401_v25, %v401_v25  ;;  %v412_v35 = vadd.f32 %v401_v25, %v399_v17 }
  0xb3   :  { %v425_v39 = vadd.f32 %v422_v32, %v421_v34 }
  0xb6   :  { %v403_v28 = vpop.f32.mrf.mxu2 }
  0xb7   :  { %v404_v29 = vadd.f32 %v403_v28, %v385_v27  ;;  %v386_v31 = vpop.f32.mrf.mxu1 }
  0xb8   :  { %v387_v37 = vadd.f32 %v386_v31, %v368_v33 }
  0xb9   :  { %410 = vst [vmem:[%s772_s5 + $0x10] sm:$0xff] %v404_v29  ;;  %v423_v36 = vmul.f32 %v404_v29, %v404_v29  ;;  %v413_v40 = vadd.f32 %v412_v35, %v404_v29 }
  0xbb   :  { %v426_v42 = vadd.f32 %v425_v39, %v423_v36 }
  0xbe   :  { %v405_v38 = vpop.f32.mrf.mxu2 }
  0xbf   :  { %v406_v41 = vadd.f32 %v405_v38, %v387_v37 }
  0xc1   :  { %411 = vst [vmem:[%s772_s5 + $0x18] sm:$0xff] %v406_v41  ;;  %v414_v43 = vadd.f32 %v413_v40, %v406_v41  ;;  %v424_v44 = vmul.f32 %v406_v41, %v406_v41 }
  0xc3   :  { %v415_v45 = vrot.slane %v414_v43, 4  ;;  %v427_v46 = vadd.f32 %v426_v42, %v424_v44 }
  0xc5   :  { %v416_v47 = vadd.f32 %v415_v45, %v414_v43  ;;  %v428_v48 = vrot.slane %v427_v46, 4 }
  0xc7   :  { %v417_v49 = vrot.slane %v416_v47, 2  ;;  %v429_v50 = vadd.f32 %v428_v48, %v427_v46 }
  0xc9   :  { %v418_v51 = vadd.f32 %v417_v49, %v416_v47  ;;  %v430_v52 = vrot.slane %v429_v50, 2 }
  0xcb   :  { %v419_v53 = vrot.slane %v418_v51, 1  ;;  %v431_v54 = vadd.f32 %v430_v52, %v429_v50 }
  0xcd   :  { %v432_v55 = vrot.slane %v431_v54, 1  ;;  %v420_v56 = vadd.f32 %v419_v53, %v418_v51 }
  0xcf   :  { %v433_v57 = vadd.f32 %v432_v55, %v431_v54 }
  0xd1   :  { %v434_v58 = vsel %vm54_vm0, %v420_v56, %v433_v57 }
  0xd2   :  { %435 = vst [vmem:[%s773_s6] sm:$0x3] %v434_v58 }

</bundles_post_ra>
